<compile_context>
chip_gen: v7x
topology: tpu7x:2x2x1
jax: 0.10.0
libtpu: 0.0.40
codegen_flags: <defaults>
</compile_context>

<pallas_src>
import functools

import jax
import jax.numpy as jnp
from jax import lax
from jax.experimental import pallas as pl
from jax.experimental.pallas import tpu as pltpu


def _round_up(n, m):
    return ((n + m - 1) // m) * m


def _value_net_kernel(x_ref, slab_ref, o_ref, *, S, H1, H2, c_w2, c_vec,
                      matmul_dtype):
    """One batch tile: o[0, :] = Wh @ relu(W2 @ relu(W1 @ x^T + b1) + b2) + bh."""
    cast = lambda a: a.astype(matmul_dtype)

    x = x_ref[...]                                # (TB, S)  natural layout
    w1 = slab_ref[0:H1, 0:S]                      # (H1, S)
    w2 = slab_ref[0:H2, c_w2:c_w2 + H1]           # (H2, H1)
    wh = slab_ref[0:H2, c_vec + 0:c_vec + 1]      # (H2, 1)
    b1 = slab_ref[0:H1, c_vec + 1:c_vec + 2]      # (H1, 1)
    b2 = slab_ref[0:H2, c_vec + 2:c_vec + 3]      # (H2, 1)
    bh = slab_ref[0:1, c_vec + 3:c_vec + 4]       # (1, 1)

    # Hidden layer 1: contract the feature dim of W1 (H1,S) with the feature
    # dim of the x tile (TB,S) -> (H1, TB).  Batch ends up on the lane axis
    # with no wrapper- or kernel-side transpose op.
    h = lax.dot_general(cast(w1), cast(x), (((1,), (1,)), ((), ())),
                        preferred_element_type=jnp.float32)
    h = jnp.maximum(h + b1, 0.0)                  # (H1, TB)

    # Hidden layer 2: relu(W2 @ h + b2) -> (H2, TB)
    h = jnp.dot(cast(w2), cast(h), preferred_element_type=jnp.float32)
    h = jnp.maximum(h + b2, 0.0)                  # (H2, TB)

    # Head off the MXU: VPU multiply + XLU sublane reduce -> (1, TB).
    # NOTE: padded batch lanes of a ragged edge block carry garbage that is
    # masked on store; never add a reduction over the batch lanes here.
    v = jnp.sum(wh * h, axis=0, keepdims=True) + bh
    o_ref[...] = v.astype(o_ref.dtype)


def pack_value_net_params(params):
    """Pack all weights/biases (PyTorch [out, in] layout) into one f32 slab.

    Lane-aligned column layout (every segment starts on a 128 multiple):
      [0 : c_w2)            W1   rows 0..H1, cols 0..S
      [c_w2 : c_vec)        W2   rows 0..H2, cols 0..H1
      [c_vec : c_vec+128)   vector segment: col0=Wh^T, col1=b1, col2=b2, col3=bh
    Do this ONCE per parameter set, outside the hot loop.
    """
    w1, b1 = params["w1"], params["b1"]           # (H1, S), (H1,)
    w2, b2 = params["w2"], params["b2"]           # (H2, H1), (H2,)
    wh, bh = params["wh"], params["bh"]           # (1, H2), (1,)
    H1, S = w1.shape
    H2 = w2.shape[0]
    rows = _round_up(max(H1, H2), 8)
    c_w2 = _round_up(max(S, 1), 128)
    c_vec = c_w2 + _round_up(H1, 128)
    ncols = c_vec + 128

    slab = jnp.zeros((rows, ncols), jnp.float32)
    slab = slab.at[:H1, 0:S].set(w1)
    slab = slab.at[:H2, c_w2:c_w2 + H1].set(w2)
    slab = slab.at[:H2, c_vec + 0].set(wh[0])
    slab = slab.at[:H1, c_vec + 1].set(b1)
    slab = slab.at[:H2, c_vec + 2].set(b2)
    slab = slab.at[0, c_vec + 3].set(bh[0])
    return slab


def value_net_forward(x, slab, *, state_dim, hidden_dims, block_b=256,
                      matmul_dtype=jnp.float32):
    """x: [B, state_dim] f32; slab: packed params. Returns [B, 1] f32."""
    assert len(hidden_dims) == 2, "this kernel fuses a 2-hidden-layer critic"
    assert block_b % 128 == 0, "batch tile must be a multiple of the lane width"
    B, S = x.shape
    assert S == state_dim
    H1, H2 = hidden_dims
    rows = _round_up(max(H1, H2), 8)
    c_w2 = _round_up(max(S, 1), 128)
    c_vec = c_w2 + _round_up(H1, 128)
    ncols = c_vec + 128
    assert slab.shape == (rows, ncols), (slab.shape, (rows, ncols))

    nb = pl.cdiv(B, block_b)   # ragged last block is masked by Pallas

    kernel = functools.partial(
        _value_net_kernel, S=S, H1=H1, H2=H2, c_w2=c_w2, c_vec=c_vec,
        matmul_dtype=matmul_dtype)

    out = pl.pallas_call(
        kernel,
        out_shape=jax.ShapeDtypeStruct((1, B), jnp.float32),
        grid_spec=pltpu.PrefetchScalarGridSpec(
            num_scalar_prefetch=0,
            grid=(nb,),
            in_specs=[
                # x tile in natural (B, S) layout: new batch slice each step.
                pl.BlockSpec((block_b, S), lambda i: (i, 0)),
                # Parameter slab: constant index map -> DMA'd once, resident.
                pl.BlockSpec((rows, ncols), lambda i: (0, 0)),
            ],
            out_specs=pl.BlockSpec((1, block_b), lambda i: (0, i)),
        ),
        compiler_params=pltpu.CompilerParams(
            dimension_semantics=("parallel",),
            vmem_limit_bytes=32 * 1024 * 1024),
    )(x, slab)

    # (1, B) -> (B, 1): metadata-only reshape, no extra HBM traffic.
    return out.reshape(B, 1)


def init_value_net_params(key, state_dim, hidden_layers_dim):
    """PyTorch nn.Linear-style U(-1/sqrt(fan_in), 1/sqrt(fan_in)), [out, in]."""
    assert len(hidden_layers_dim) == 2, "this script builds a 2-hidden-layer net"
    dims = [state_dim] + list(hidden_layers_dim) + [1]
    names = ["1", "2", "h"]
    params = {}
    for i, (fan_in, fan_out) in enumerate(zip(dims[:-1], dims[1:])):
        key, kw, kb = jax.random.split(key, 3)
        bound = 1.0 / (fan_in ** 0.5)
        params["w" + names[i]] = jax.random.uniform(
            kw, (fan_out, fan_in), jnp.float32, -bound, bound)
        params["b" + names[i]] = jax.random.uniform(
            kb, (fan_out,), jnp.float32, -bound, bound)
    return params


if __name__ == "__main__":
    key = jax.random.PRNGKey(0)
    state_dim = 4
    hidden_layers_dim = [32, 32]
    # 200 is deliberately NOT a multiple of the 256-wide batch tile: one grid
    # step with a masked ragged edge on both the x read and the output store.
    batch = 200

    kx, kp = jax.random.split(key)
    x = jax.random.normal(kx, (batch, state_dim), jnp.float32)
    params = init_value_net_params(kp, state_dim, hidden_layers_dim)
    slab = pack_value_net_params(params)

    out = value_net_forward(x, slab, state_dim=state_dim,
                            hidden_dims=tuple(hidden_layers_dim))
    out = jax.block_until_ready(out)

    # Plain-JAX reference of the same forward pass (PyTorch semantics:
    # y = x @ W.T + b per layer, ReLU between hidden layers).
    h = jnp.maximum(x @ params["w1"].T + params["b1"], 0.0)
    h = jnp.maximum(h @ params["w2"].T + params["b2"], 0.0)
    ref = h @ params["wh"].T + params["bh"]
    assert out.shape == (batch, 1)
    assert jnp.allclose(out, ref, atol=1e-5, rtol=1e-5)

    print("KERNEL_OK")
</pallas_src>

<mosaic_0001>
module attributes {stable_mosaic.version = 11 : i64} {
  func.func @_value_net_kernel(%arg0: i32, %arg1: memref<256x4xf32, #tpu.memory_space<vmem>>, %arg2: memref<32x384xf32, #tpu.memory_space<vmem>>, %arg3: memref<1x256xf32, #tpu.memory_space<vmem>>) attributes {dimension_semantics = [#tpu.dimension_semantics<parallel>], iteration_bounds = array<i64: 1>, scalar_prefetch = 0 : i64, scratch_operands = 0 : i64, tpu.core_type = #tpu.core_type<tc>, window_params = [{transform_indices = @transform_0, window_bounds = array<i64: 256, 4>}, {pipeline_mode = #tpu.pipeline_mode<synchronous>, transform_indices = @transform_1, window_bounds = array<i64: 32, 384>}, {transform_indices = @transform_2, window_bounds = array<i64: 1, 256>}]} {
    %c0 = arith.constant 0 : index
    %c0_0 = arith.constant 0 : index
    %0 = vector.load %arg1[%c0, %c0_0] : memref<256x4xf32, #tpu.memory_space<vmem>>, vector<256x4xf32>
    %c0_1 = arith.constant 0 : index
    %c0_2 = arith.constant 0 : index
    %1 = vector.load %arg2[%c0_1, %c0_2] : memref<32x384xf32, #tpu.memory_space<vmem>>, vector<32x4xf32>
    %c0_3 = arith.constant 0 : index
    %c128 = arith.constant 128 : index
    %2 = vector.load %arg2[%c0_3, %c128] : memref<32x384xf32, #tpu.memory_space<vmem>>, vector<32x32xf32>
    %c0_4 = arith.constant 0 : index
    %c256 = arith.constant 256 : index
    %3 = vector.load %arg2[%c0_4, %c256] : memref<32x384xf32, #tpu.memory_space<vmem>>, vector<32x1xf32>
    %c0_5 = arith.constant 0 : index
    %c257 = arith.constant 257 : index
    %4 = vector.load %arg2[%c0_5, %c257] : memref<32x384xf32, #tpu.memory_space<vmem>>, vector<32x1xf32>
    %c0_6 = arith.constant 0 : index
    %c258 = arith.constant 258 : index
    %5 = vector.load %arg2[%c0_6, %c258] : memref<32x384xf32, #tpu.memory_space<vmem>>, vector<32x1xf32>
    %c0_7 = arith.constant 0 : index
    %c259 = arith.constant 259 : index
    %6 = vector.load %arg2[%c0_7, %c259] : memref<32x384xf32, #tpu.memory_space<vmem>>, vector<1x1xf32>
    %cst = arith.constant dense<0.000000e+00> : vector<32x256xf32>
    %7 = tpu.matmul %1, %0, %cst {dimension_numbers = #tpu.dot_dimension_numbers<[1], [1], [0], [0], [0, 0, 1, 0], [], []>} : vector<32x4xf32>, vector<256x4xf32>, vector<32x256xf32> -> vector<32x256xf32>
    %8 = vector.broadcast %4 : vector<32x1xf32> to vector<32x256xf32>
    %9 = arith.addf %7, %8 : vector<32x256xf32>
    %cst_8 = arith.constant 0.000000e+00 : f32
    %10 = vector.broadcast %cst_8 : f32 to vector<32x256xf32>
    %11 = arith.maximumf %9, %10 : vector<32x256xf32>
    %cst_9 = arith.constant dense<0.000000e+00> : vector<32x256xf32>
    %12 = tpu.matmul %2, %11, %cst_9 {dimension_numbers = #tpu.dot_dimension_numbers<[1], [0], [0], [1], [0, 0, 1, 1], [], []>} : vector<32x32xf32>, vector<32x256xf32>, vector<32x256xf32> -> vector<32x256xf32>
    %13 = vector.broadcast %5 : vector<32x1xf32> to vector<32x256xf32>
    %14 = arith.addf %12, %13 : vector<32x256xf32>
    %cst_10 = arith.constant 0.000000e+00 : f32
    %15 = vector.broadcast %cst_10 : f32 to vector<32x256xf32>
    %16 = arith.maximumf %14, %15 : vector<32x256xf32>
    %17 = vector.broadcast %3 : vector<32x1xf32> to vector<32x256xf32>
    %18 = arith.mulf %17, %16 : vector<32x256xf32>
    %cst_11 = arith.constant dense<0.000000e+00> : vector<256xf32>
    %19 = vector.multi_reduction <add>, %18, %cst_11 [0] : vector<32x256xf32> to vector<256xf32>
    %20 = vector.shape_cast %19 : vector<256xf32> to vector<1x256xf32>
    %21 = vector.broadcast %6 : vector<1x1xf32> to vector<1x256xf32>
    %22 = arith.addf %20, %21 : vector<1x256xf32>
    %c0_12 = arith.constant 0 : index
    %c0_13 = arith.constant 0 : index
    %23 = vector.load %arg3[%c0_12, %c0_13] : memref<1x256xf32, #tpu.memory_space<vmem>>, vector<1x256xf32>
    tpu.vector_store %arg3[%c0_12, %c0_13], %22 {strides = array<i32>} : memref<1x256xf32, #tpu.memory_space<vmem>>, vector<1x256xf32>,
    return
  }
  func.func @transform_0(%arg0: i32) -> (i32, i32) {
    %c0_i32 = arith.constant 0 : i32
    %c0_i32_0 = arith.constant 0 : i32
    return %arg0, %c0_i32 : i32, i32
  }
  func.func @transform_1(%arg0: i32) -> (i32, i32) {
    %c0_i32 = arith.constant 0 : i32
    %c0_i32_0 = arith.constant 0 : i32
    %c0_i32_1 = arith.constant 0 : i32
    return %c0_i32, %c0_i32_0 : i32, i32
  }
  func.func @transform_2(%arg0: i32) -> (i32, i32) {
    %c0_i32 = arith.constant 0 : i32
    %c0_i32_0 = arith.constant 0 : i32
    return %c0_i32, %arg0 : i32, i32
  }
}

</mosaic_0001>

<bundles_post_ra>
// kernel: tpu_custom_call.1
= control target key start
LH: loop header
LB: loop body
LE: loop exit
PB: predicated region body
PF: predicated region fallthrough
CT: control target
= control target key end

     0   :  { %vm77_vm0 = vcmask 31744   ;;  %v669_v7 = vmov 1   ;;  %s908_s0 = inlined_call_operand.vmem [shape: f32[200,4], index: 0, kind: input, shape index: {}]   ;;  %s909_s1 = inlined_call_operand.vmem [shape: f32[32,384], index: 1, kind: input, shape index: {}]   ;;  %s910_s2 = inlined_call_operand.hbm [shape: f32[1,200], index: 2, kind: output, shape index: {}]  }
   0x1   :  { %v28_v0 = vld [vmem:[%s908_s0 + $0x80] sm:$0xff]  ;;  %v29_v1 = vld [vmem:[%s908_s0 + $0x88] sm:$0xff]  ;;  %vm702_vm1 = vmpackc.low %vm77_vm0, %vm77_vm0  ;;  %638 = vset.pattern.permute.xlu0 %v669_v7  ;;  %639 = vset.pattern.permute.xlu1 %v669_v7 }
   0x2   :  { %v12_v2 = vld [vmem:[%s908_s0] sm:$0xff]  ;;  %v575_v3 = vpack.c.bf16 %v29_v1, %v28_v0  ;;  %v13_v5 = vld [vmem:[%s908_s0 + $0x8] sm:$0xff]  ;;  %v30_v6 = vld [vmem:[%s908_s0 + $0x90] sm:$0xff] }
   0x3   :  { %v578_v8 = vpack.c.bf16 %v13_v5, %v12_v2  ;;  %v31_v9 = vld [vmem:[%s908_s0 + $0x98] sm:$0xff]  ;;  %v14_v11 = vld [vmem:[%s908_s0 + $0x10] sm:$0xff]  ;;  %v32_v13 = vld [vmem:[%s908_s0 + $0xa0] sm:$0xff] }
   0x4   :  { %577 = vmatprep.subr.msk.bf16.mxu0 %vm702_vm1, %v575_v3  ;;  %v581_v10 = vpack.c.bf16 %v31_v9, %v30_v6  ;;  %v15_v12 = vld [vmem:[%s908_s0 + $0x18] sm:$0xff]  ;;  %v33_v14 = vld [vmem:[%s908_s0 + $0xa8] sm:$0xff]  ;;  %v44_v17 = vld [vmem:[%s909_s1] sm:$0xff] }
   0x5   :  { %580 = vmatpush3.bf16.xpose.msk.msra.mxu0 %vm702_vm1, %v578_v8  ;;  %v584_v15 = vpack.c.bf16 %v15_v12, %v14_v11  ;;  %v587_v16 = vpack.c.bf16 %v33_v14, %v32_v13  ;;  %v16_v18 = vld [vmem:[%s908_s0 + $0x20] sm:$0xff]  ;;  %567 = vmatprep.mubr.msk.f32.mxu0 %vm77_vm0, %v44_v17  ;;  %v745_v19 = vld [vmem:[%s909_s1 + $0x10] sm:$0xff]  ;;  %v17_v20 = vld [vmem:[%s908_s0 + $0x28] sm:$0xff] }
   0x6   :  { %583 = vmatprep.subr.msk.bf16.mxu0 %vm702_vm1, %v581_v10  ;;  %59 = vperm.xlu0 %638, %v745_v19   ;;  %v756_v21 = vld [vmem:[%s909_s1 + $0x40] sm:$0xff] }
   0xd   :  { %586 = vmatpush3.bf16.xpose.msk.msra.mxu0 %vm702_vm1, %v584_v15 }
   0xe   :  { %589 = vmatprep.subr.msk.bf16.mxu0 %vm702_vm1, %v587_v16 }
   0xf   :  { %7 = vsyncpa [#allocation3], 0  ;;  %v34_v22 = vld [vmem:[%s908_s0 + $0xb0] sm:$0xff]  ;;  %v35_v23 = vld [vmem:[%s908_s0 + $0xb8] sm:$0xff]  ;;  %69 = vperm.xlu1 %639, %v756_v21   ;;  %v590_v26 = vpack.c.bf16 %v17_v20, %v16_v18  ;;  %v670_v58 = vmov 0.0   ;;  %v671_v59 = vmov 2  }
  0x10   :  { %v767_v24 = vld [vmem:[%s909_s1 + $0x28] sm:$0xff]  ;;  %v773_v25 = vld [vmem:[%s909_s1 + $0x58] sm:$0xff]  ;;  %v593_v27 = vpack.c.bf16 %v35_v23, %v34_v22  ;;  %v18_v28 = vld [vmem:[%s908_s0 + $0x30] sm:$0xff]  ;;  %376 = vmatprep.mubr.f32.mxu1 %v670_v58  ;;  %v672_v60 = vmov 0   ;;  %v673_v62 = vmov 3   ;;  %vm299_vm2 = vcmask 261120  }
  0x11   :  { %64 = vperm.xlu0 %638, %v767_v24   ;;  %v19_v29 = vld [vmem:[%s908_s0 + $0x38] sm:$0xff]  ;;  %v36_v30 = vld [vmem:[%s908_s0 + $0xc0] sm:$0xff]  ;;  %v37_v31 = vld [vmem:[%s908_s0 + $0xc8] sm:$0xff] }
  0x12   :  { %v596_v32 = vpack.c.bf16 %v19_v29, %v18_v28  ;;  %v599_v33 = vpack.c.bf16 %v37_v31, %v36_v30  ;;  %v20_v34 = vld [vmem:[%s908_s0 + $0x40] sm:$0xff]  ;;  %v21_v35 = vld [vmem:[%s908_s0 + $0x48] sm:$0xff]  ;;  %v38_v36 = vld [vmem:[%s908_s0 + $0xd0] sm:$0xff] }
  0x13   :  { %74 = vperm.xlu1 %639, %v773_v25   ;;  %v39_v37 = vld [vmem:[%s908_s0 + $0xd8] sm:$0xff]  ;;  %v602_v38 = vpack.c.bf16 %v21_v35, %v20_v34  ;;  %v22_v40 = vld [vmem:[%s908_s0 + $0x50] sm:$0xff]  ;;  %v40_v42 = vld [vmem:[%s908_s0 + $0xe0] sm:$0xff] }
  0x14   :  { %v605_v39 = vpack.c.bf16 %v39_v37, %v38_v36  ;;  %v23_v41 = vld [vmem:[%s908_s0 + $0x58] sm:$0xff]  ;;  %v41_v43 = vld [vmem:[%s908_s0 + $0xe8] sm:$0xff]  ;;  %v24_v46 = vld [vmem:[%s908_s0 + $0x60] sm:$0xff] }
  0x15   :  { %592 = vmatpush3.bf16.xpose.msk.msra.mxu0 %vm702_vm1, %v590_v26  ;;  %v608_v44 = vpack.c.bf16 %v23_v41, %v22_v40  ;;  %v611_v45 = vpack.c.bf16 %v41_v43, %v40_v42  ;;  %v25_v47 = vld [vmem:[%s908_s0 + $0x68] sm:$0xff]  ;;  %v42_v48 = vld [vmem:[%s908_s0 + $0xf0] sm:$0xff]  ;;  %v43_v49 = vld [vmem:[%s908_s0 + $0xf8] sm:$0xff]  ;;  %640 = vset.pattern.permute.xlu0 %v671_v59 }
  0x16   :  { %595 = vmatprep.subr.msk.bf16.mxu0 %vm702_vm1, %v593_v27  ;;  %v614_v50 = vpack.c.bf16 %v25_v47, %v24_v46  ;;  %v617_v51 = vpack.c.bf16 %v43_v49, %v42_v48  ;;  %v26_v52 = vld [vmem:[%s908_s0 + $0x70] sm:$0xff]  ;;  %v27_v53 = vld [vmem:[%s908_s0 + $0x78] sm:$0xff]  ;;  %v47_v57 = vld [vmem:[%s909_s1 + $0x48] sm:$0xff]  ;;  %284 = vperm.xlu0 %640, %v745_v19  }
  0x17   :  { %v620_v54 = vpack.c.bf16 %v27_v53, %v26_v52  ;;  %v45_v55 = vld [vmem:[%s909_s1 + $0x18] sm:$0xff]  ;;  %v46_v56 = vld [vmem:[%s909_s1 + $0x30] sm:$0xff]  ;;  %641 = vset.pattern.permute.xlu1 %v671_v59  ;;  %v48_v31 = vld [vmem:[%s909_s1 + $0x8] sm:$0xff] }
  0x18   :  { %288 = vperm.xlu1 %641, %v767_v24   ;;  %v56_v61 = vld [vmem:[%s909_s1 + $0x10] ss:$0 sm:$0xff] }
  0x19   :  { %v51_v34 = vld [vmem:[%s909_s1 + $0x50] sm:$0xff] }
  0x1a   :  { %296 = vperm.xlu0 %640, %v773_v25  }
  0x1c   :  { %292 = vperm.xlu1 %641, %v756_v21  }
  0x1d   :  { %598 = vmatpush3.bf16.xpose.msk.msra.mxu0 %vm702_vm1, %v596_v32  ;;  %v49_v32 = vld [vmem:[%s909_s1 + $0x20] sm:$0xff] }
  0x1e   :  { %601 = vmatprep.subr.msk.bf16.mxu0 %vm702_vm1, %v599_v33  ;;  %643 = vset.pattern.permute.xlu0 %v672_v60  ;;  %v50_v33 = vld [vmem:[%s909_s1 + $0x38] sm:$0xff]  ;;  %s675_s1 = smov [#allocation2]  }
  0x1f   :  { %414 = vperm.xlu0 %643, %v767_v24   ;;  %s487_s14 = sshll.u32 %s675_s1, 4  ;;  %s488_s14 = int_to_ptr.vmem [resolvable:$true] %s487_s14 }
  0x20   :  { %642 = vset.pattern.permute.xlu1 %v672_v60  ;;  %s645_s15 = scalar_lea.vmem %s488_s14, 32  ;;  %p650_p1 = scmp.lt.s32.totalorder %s488_s14, %s488_s14 }
  0x21   :  { %410 = vperm.xlu1 %642, %v745_v19   ;;  %p646_p0 = scmp.ne.s32.totalorder %s488_s14, %s645_s15  ;;  %p651_p2 = scmp.lt.s32.totalorder %s645_s15, %s645_s15 }
  0x23   :  { %644 = vset.pattern.permute.xlu0 %v673_v62  ;;  %p652_p3 = por %p651_p2, %p650_p1 }
  0x24   :  { %453 = vperm.xlu0 %644, %v56_v61  }
  0x25   :  { %604 = vmatpush3.bf16.xpose.msk.msra.mxu0 %vm702_vm1, %v602_v38  ;;  %418 = vperm.xlu1 %642, %v756_v21   ;;  %p653_p4 = pnand %p652_p3, %p646_p0 }
  0x26   :  { %607 = vmatprep.subr.msk.bf16.mxu0 %vm702_vm1, %v605_v39 }
  0x29   :  { %422 = vperm.xlu1 %642, %v773_v25  }
  0x2d   :  { %610 = vmatpush3.bf16.xpose.msk.msra.mxu0 %vm702_vm1, %v608_v44 }
  0x2e   :  { %613 = vmatprep.subr.msk.bf16.mxu0 %vm702_vm1, %v611_v45 }
  0x35   :  { %616 = vmatpush3.bf16.xpose.msk.msra.mxu0 %vm702_vm1, %v614_v50 }
  0x36   :  { %619 = vmatprep.subr.msk.bf16.mxu0 %vm702_vm1, %v617_v51 }
  0x3d   :  { %622 = vmatpush3.bf16.xpose.msk.msra.mxu0 %vm702_vm1, %v620_v54 }
  0x44   :  { %568 = vmatmul.mubr.msk.f32.vlgmr.msra.gmra.mrb[0].mxu0 %vm77_vm0, %v44_v17 }
  0x45   :  { %569 = vmatprep.mubr.msk.f32.mxu0 %vm77_vm0, %v45_v55 }
  0x48   :  { %570 = vmatmul.mubr.msk.f32.gmra.mrb[2].mxu0 %vm77_vm0, %v45_v55 }
  0x49   :  { %571 = vmatprep.mubr.msk.f32.mxu0 %vm77_vm0, %v46_v56 }
  0x4c   :  { %572 = vmatmul.mubr.msk.f32.gmra.mrb[4].mxu0 %vm77_vm0, %v46_v56 }
  0x4d   :  { %573 = vmatprep.mubr.msk.f32.mxu0 %vm77_vm0, %v47_v57 }
  0x50   :  { %574 = vmatmul.mubr.msk.f32.gmra.mrb[6].mxu0 %vm77_vm0, %v47_v57 }
  0x85   :  { %v60_v63 = vpop.permute.xlu0 %59 }
  0x8e   :  { %v70_v8 = vpop.permute.xlu1 %69 }
  0x90   :  { %v65_v2 = vpop.permute.xlu0 %64 }
  0x92   :  { %v75_v19 = vpop.permute.xlu1 %74 }
  0x95   :  { %v285_v36 = vpop.permute.xlu0 %284 }
  0x97   :  { %v289_v35 = vpop.permute.xlu1 %288 }
  0x99   :  { %v297_v39 = vpop.permute.xlu0 %296 }
  0x9b   :  { %v293_v37 = vpop.permute.xlu1 %292 }
  0x9e   :  { %v415_v50 = vpop.permute.xlu0 %414 }
  0xa0   :  { %v411_v43 = vpop.permute.xlu1 %410 }
  0xa4   :  { %v419_v59 = vpop.permute.xlu1 %418 }
 0x117   :  { %v252_v0 = vpop.f32.mrb[0].mxu0 }
 0x118   :  { %v254_v1 = vpop.f32.mrb[1].mxu0  ;;  %v253_v3 = vadd.f32 %v252_v0, %v60_v63 }
 0x119   :  { %v255_v4 = vadd.f32 %v254_v1, %v60_v63 }
 0x11a   :  { %v275_v10 = vmax.f32 %v253_v3, 0.0 }
 0x11b   :  { %v258_v5 = vpop.f32.mrb[2].mxu0  ;;  %v276_v12 = vmax.f32 %v255_v4, 0.0 }
 0x11c   :  { %v259_v6 = vadd.f32 %v258_v5, %v65_v2  ;;  %v260_v7 = vpop.f32.mrb[3].mxu0 }
 0x11d   :  { %v261_v9 = vadd.f32 %v260_v7, %v65_v2 }
 0x11e   :  { %v277_v11 = vmax.f32 %v259_v6, 0.0 }
 0x11f   :  { %v278_v13 = vmax.f32 %v261_v9, 0.0  ;;  %v264_v14 = vpop.f32.mrb[4].mxu0 }
 0x120   :  { %v266_v15 = vpop.f32.mrb[5].mxu0  ;;  %v625_v16 = vpack.c.bf16 %v277_v11, %v275_v10  ;;  %v265_v18 = vadd.f32 %v264_v14, %v70_v8  ;;  %v423_v10 = vpop.permute.xlu1 %422 }
 0x121   :  { %v623_v17 = vpack.c.bf16 %v278_v13, %v276_v12  ;;  %v267_v20 = vadd.f32 %v266_v15, %v70_v8 }
 0x122   :  { %v279_v25 = vmax.f32 %v265_v18, 0.0 }
 0x123   :  { %v270_v21 = vpop.f32.mrb[6].mxu0  ;;  %624 = vmatprep.subr.bf16.mxu1 %v623_v17  ;;  %v280_v27 = vmax.f32 %v267_v20, 0.0 }
 0x124   :  { %v271_v22 = vadd.f32 %v270_v21, %v75_v19  ;;  %v272_v23 = vpop.f32.mrb[7].mxu0  ;;  %626 = vmatpush1.bf16.msra.mxu1 %v625_v16 }
 0x125   :  { %v273_v24 = vadd.f32 %v272_v23, %v75_v19 }
 0x126   :  { %v281_v26 = vmax.f32 %v271_v22, 0.0  ;;  %v674_v22 = vmov 1966171168  }
 0x127   :  { %v282_v28 = vmax.f32 %v273_v24, 0.0  ;;  %v462_v23 = vunpack.c.l.s4 %v674_v22  ;;  %v464_v24 = vlaneseq }
 0x128   :  { %v629_v29 = vpack.c.bf16 %v281_v26, %v279_v25 }
 0x129   :  { %v627_v30 = vpack.c.bf16 %v282_v28, %v280_v27  ;;  %vm478_vm3 = vcmp.lt.s32.totalorder %v464_v24, 256 }
 0x12b   :  { %628 = vmatprep.subr.bf16.mxu1 %v627_v30  ;;  %v465_v30 = vshrl.u32 %v464_v24, 7 }
 0x12c   :  { %630 = vmatpush1.bf16.msra.mxu1 %v629_v29  ;;  %v463_v29 = vunpack.c.0.s8 %v462_v23 }
 0x12f   :  { %531 = vmatmul.mubr.msk.f32.vlgmr.msra.gmra.mrb[0].mxu1 %vm299_vm2, %v48_v31  ;;  %v454_v31 = vpop.permute.xlu0 %453 }
 0x130   :  { %382 = vmatprep.mubr.f32.mxu1 %v670_v58 }
 0x133   :  { %532 = vmatmul.mubr.msk.f32.gmra.mrb[2].mxu1 %vm299_vm2, %v49_v32 }
 0x134   :  { %388 = vmatprep.mubr.f32.mxu1 %v670_v58 }
 0x137   :  { %533 = vmatmul.mubr.msk.f32.gmra.mrb[4].mxu1 %vm299_vm2, %v50_v33 }
 0x138   :  { %394 = vmatprep.mubr.f32.mxu1 %v670_v58 }
 0x13b   :  { %534 = vmatmul.mubr.msk.f32.gmra.mrb[6].mxu1 %vm299_vm2, %v51_v34 }
 0x202   :  { %v378_v38 = vpop.f32.mrb[0].mxu1 }
 0x203   :  { %v379_v40 = vadd.f32 %v378_v38, %v285_v36  ;;  %v380_v41 = vpop.f32.mrb[1].mxu1 }
 0x204   :  { %v381_v42 = vadd.f32 %v380_v41, %v285_v36  ;;  %v466_v36 = vsub.s32 %v463_v29, %v465_v30 }
 0x205   :  { %v401_v45 = vmax.f32 %v379_v40, 0.0 }
 0x206   :  { %v384_v44 = vpop.f32.mrb[2].mxu1  ;;  %v402_v48 = vmax.f32 %v381_v42, 0.0 }
 0x207   :  { %v385_v46 = vadd.f32 %v384_v44, %v289_v35  ;;  %v386_v47 = vpop.f32.mrb[3].mxu1  ;;  %v425_v54 = vmul.f32 %v411_v43, %v401_v45 }
 0x208   :  { %v387_v49 = vadd.f32 %v386_v47, %v289_v35  ;;  %v426_v58 = vmul.f32 %v411_v43, %v402_v48 }
 0x209   :  { %v403_v51 = vmax.f32 %v385_v46, 0.0 }
 0x20a   :  { %v404_v52 = vmax.f32 %v387_v49, 0.0  ;;  %v390_v53 = vpop.f32.mrb[4].mxu1 }
 0x20b   :  { %v427_v55 = vmul.f32 %v415_v50, %v403_v51  ;;  %v391_v56 = vadd.f32 %v390_v53, %v293_v37  ;;  %v392_v57 = vpop.f32.mrb[5].mxu1 }
 0x20c   :  { %v428_v60 = vmul.f32 %v415_v50, %v404_v52  ;;  %v393_v61 = vadd.f32 %v392_v57, %v293_v37 }
 0x20d   :  { %v433_v62 = vadd.f32 %v427_v55, %v425_v54  ;;  %v405_v63 = vmax.f32 %v391_v56, 0.0 }
 0x20e   :  { %v442_v0 = vadd.f32 %v428_v60, %v426_v58  ;;  %v406_v1 = vmax.f32 %v393_v61, 0.0  ;;  %v396_v2 = vpop.f32.mrb[6].mxu1 }
 0x20f   :  { %v429_v3 = vmul.f32 %v419_v59, %v405_v63  ;;  %v397_v4 = vadd.f32 %v396_v2, %v297_v39  ;;  %v398_v5 = vpop.f32.mrb[7].mxu1 }
 0x210   :  { %v430_v6 = vmul.f32 %v419_v59, %v406_v1  ;;  %v399_v7 = vadd.f32 %v398_v5, %v297_v39 }
 0x211   :  { %v434_v8 = vadd.f32 %v433_v62, %v429_v3  ;;  %v407_v9 = vmax.f32 %v397_v4, 0.0 }
 0x212   :  { %v443_v11 = vadd.f32 %v442_v0, %v430_v6  ;;  %v408_v12 = vmax.f32 %v399_v7, 0.0 }
 0x213   :  { %v431_v13 = vmul.f32 %v423_v10, %v407_v9 }
 0x214   :  { %v432_v14 = vmul.f32 %v423_v10, %v408_v12 }
 0x215   :  { %v435_v15 = vadd.f32 %v434_v8, %v431_v13 }
 0x216   :  { %v444_v16 = vadd.f32 %v443_v11, %v432_v14 }
 0x217   :  { %v436_v17 = vrot.slane %v435_v15, 4 }
 0x218   :  { %v445_v18 = vrot.slane %v444_v16, 4 }
 0x219   :  { %v437_v19 = vadd.f32 %v436_v17, %v435_v15 }
 0x21a   :  { %v446_v20 = vadd.f32 %v445_v18, %v444_v16 }
 0x21b   :  { %v438_v21 = vrot.slane %v437_v19, 2 }
 0x21c   :  { %v447_v25 = vrot.slane %v446_v20, 2 }
 0x21d   :  { %v439_v26 = vadd.f32 %v438_v21, %v437_v19 }
 0x21e   :  { %v448_v27 = vadd.f32 %v447_v25, %v446_v20 }
 0x21f   :  { %v440_v28 = vrot.slane %v439_v26, 1 }
 0x220   :  { %v449_v32 = vrot.slane %v448_v27, 1 }
 0x221   :  { %v441_v33 = vadd.f32 %v440_v28, %v439_v26 }
 0x222   :  { %v450_v34 = vadd.f32 %v449_v32, %v448_v27 }
 0x223   :  { %v456_v35 = vadd.f32 %v454_v31, %v441_v33 }
 0x224   :  { %v457_v37 = vadd.f32 %v454_v31, %v450_v34 }
 0x226   :  { %v460_v38 = vcombine.low %v456_v35, %v457_v37 }
 0x228   :  { %v467_v39 = vrot.slane %v460_v38, %v466_v36 }
 0x22a   :  { %v474_v40 = vrot.slane %v467_v39, %v466_v36 }
 0x22c   :  { %480 = vst.msk [vmem:[#allocation2] sm:$0x3] %vm478_vm3, %v474_v40 }
 0x22d   :  { %656 = shalt.err (!%p653_p4)
}
 0x22e   :  { %s657_s18 = scalar_lea.hbm %s910_s2, 32 }
 0x22f   :  { %p658_p5 = scmp.ne.s32.totalorder %s910_s2, %s657_s18  ;;  %p661_p6 = scmp.lt.u32.totalorder %s657_s18, %s910_s2 }
 0x231   :  { %p663_p7 = pnand %p661_p6, %p658_p5 }
 0x233   :  { %666 = shalt.err (!%p663_p7)
}
 0x234   :  { %490 = dma.vmem_to_hbm [thread:$0]  %s488_s14, 32, %s910_s2, [#allocation3]  }
 0x235   :  { %667 = dma.done.wait [#allocation3], 32  }
 0x236   :  { %668 = vsyncadd [#allocation3], 4294967264 }
 0x237   :  { %494 = vsyncpa [#allocation3], 1 }

</bundles_post_ra>
